<compile_context>
chip_gen: v7x
topology: tpu7x:2x2x1
jax: 0.10.0
libtpu: 0.0.40
codegen_flags: <defaults>
</compile_context>

<pallas_src>
import math

import jax
import jax.numpy as jnp
from jax.experimental import pallas as pl
from jax.experimental.pallas import tpu as pltpu


def _round_up(x, m):
    return ((x + m - 1) // m) * m


def _apply_activation(h, name):
    if name == "ReLU":
        return jnp.maximum(h, 0.0)
    if name == "Sigmoid":
        return jax.nn.sigmoid(h)
    if name == "Tanh":
        return jnp.tanh(h)
    if name is None or name == "Identity":
        return h
    raise ValueError(f"unsupported activation: {name}")


def _make_mlp_kernel(actv_names, final_sigmoid):
    """Kernel over refs: (x, w0, b0, w1, b1, ..., out).

    x streams in as f32 and is cast to bf16 in-kernel (cheap VPU work hidden
    under the x DMA); weights are bf16, biases f32.  Matmuls accumulate in f32
    on the MXU, bias + activation run in f32, intermediates are cast back to
    bf16 only to feed the next matmul.
    """
    n_layers = len(actv_names)

    def kernel(*refs):
        x_ref = refs[0]
        o_ref = refs[-1]
        p_refs = refs[1:-1]
        h = x_ref[...].astype(jnp.bfloat16)      # (tb, K0) f32 -> bf16 in VMEM
        for i, act in enumerate(actv_names):
            w = p_refs[2 * i][...]               # bf16 (K_i, N_i), VMEM-resident
            b = p_refs[2 * i + 1][...]           # f32  (1,   N_i)
            h = jnp.dot(h, w, preferred_element_type=jnp.float32) + b
            h = _apply_activation(h, act)        # f32
            if i + 1 < n_layers:
                h = h.astype(jnp.bfloat16)       # feed next matmul in bf16
        if final_sigmoid:
            # decoder + use_softmax branch of forward() -> torch.sigmoid on top
            h = jax.nn.sigmoid(h)
        o_ref[...] = h.astype(o_ref.dtype)

    return kernel


def _tile_geometry(batch, tile_b):
    """Balanced batch tiles from the grid count; >=2 steps when possible.

    Padding is bounded by <16 rows per tile, and batches that fit a single
    tile still produce 2 grid steps (batch > 16) so the "parallel" batch axis
    uses both TensorCores of a v7x chip.
    """
    g = pl.cdiv(batch, tile_b)
    if g < 2 and batch > 16:
        g = 2
    tb = _round_up(pl.cdiv(batch, g), 16)        # 16: bf16 sublane packing
    return g, tb, g * tb


def build_modulelist_forward(weights, biases, actv_names, *, decoder=False,
                             use_softmax=False, tile_b=1024):
    """One-time builder: casts params, returns a jitted forward(x).

    weights[i]: (in_dim_i, out_dim_i) float32 (pre-transposed vs PyTorch)
    biases[i] : (out_dim_i,)          float32
    actv_names[i]: activation after Linear i, or None (final decoder Linear).
    """
    dims = [tuple(w.shape) for w in weights]
    in_dim = dims[0][0]
    out_dim = dims[-1][1]

    # No feature padding: all weight/bias blocks are full-extent (legal
    # BlockSpecs) and stay VMEM-resident across the batch grid.
    flat_params = []
    for w, b in zip(weights, biases):
        flat_params += [w.astype(jnp.bfloat16),
                        b.astype(jnp.float32).reshape(1, -1)]

    final_sigmoid = bool(decoder and use_softmax)
    kernel = _make_mlp_kernel(actv_names, final_sigmoid)

    weight_bytes = sum(int(p.size) * p.dtype.itemsize for p in flat_params)
    trans_per_row = sum(n for (_, n), a in zip(dims, actv_names)
                        if a in ("Sigmoid", "Tanh"))
    if final_sigmoid:
        trans_per_row += out_dim
    flops_per_row = 2 * sum(k * n for k, n in dims)

    def forward(x):
        if not decoder:
            x = x.reshape(-1, 28 * 28)           # matches x.view(-1, 28*28)
        batch, k = x.shape
        assert k == in_dim, (k, in_dim)

        g, tb, b_pad = _tile_geometry(batch, tile_b)

        # Only a small row pad remains; no feature pad / dtype cast of x in
        # the wrapper -> no extra un-fused HBM pass over x.
        xp = x if b_pad == batch else jnp.pad(x, ((0, b_pad - batch), (0, 0)))

        cost = pl.CostEstimate(
            flops=flops_per_row * b_pad,
            transcendentals=trans_per_row * b_pad,
            bytes_accessed=b_pad * in_dim * 4 + weight_bytes + b_pad * out_dim * 4,
        )

        # Explicit VMEM budget: double-buffered f32 x/out streams + (possibly
        # double-buffered) resident params + headroom for Mosaic's internal
        # matmul scratch.  ~11 MiB at tb=1024 -> fits v5e's 16 MiB scoped
        # default and is far under v7x's 64 MiB physical VMEM.
        need = 2 * tb * in_dim * 4 + 2 * tb * out_dim * 4 + 2 * weight_bytes
        vmem_limit = min(max(int(need * 1.5) + (4 << 20), 16 << 20), 48 << 20)

        # x / out stream over the batch grid; weights/biases stay resident
        # (constant block index -> no per-step re-DMA).
        in_specs = [pl.BlockSpec((tb, in_dim), lambda i: (i, 0))]
        in_specs += [pl.BlockSpec(p.shape, lambda i: (0, 0))
                     for p in flat_params]
        out_specs = pl.BlockSpec((tb, out_dim), lambda i: (i, 0))

        out = pl.pallas_call(
            kernel,
            out_shape=jax.ShapeDtypeStruct((b_pad, out_dim), jnp.float32),
            grid=(g,),
            in_specs=in_specs,
            out_specs=out_specs,
            compiler_params=pltpu.CompilerParams(
                dimension_semantics=("parallel",),   # shard batch across TCs
                vmem_limit_bytes=vmem_limit,
            ),
            cost_estimate=cost,
        )(xp, *flat_params)

        return out[:batch] if b_pad != batch else out

    return jax.jit(forward)


# ----------------------------- references ----------------------------------

def _reference_forward_f32(x, weights, biases, actv_names, *, decoder=False,
                           use_softmax=False):
    """Pure-JAX f32 reference mirroring the PyTorch forward()."""
    if not decoder:
        x = x.reshape(-1, 28 * 28)
    h = x.astype(jnp.float32)
    for w, b, act in zip(weights, biases, actv_names):
        h = h @ w.astype(jnp.float32) + b.astype(jnp.float32)
        h = _apply_activation(h, act)
    if decoder and use_softmax:
        h = jax.nn.sigmoid(h)
    return h


def _reference_forward_bf16(x, weights, biases, actv_names, *, decoder=False,
                            use_softmax=False):
    """Pure-JAX reference using the same bf16-weights / f32-accumulate math."""
    if not decoder:
        x = x.reshape(-1, 28 * 28)
    h = x.astype(jnp.bfloat16)
    n = len(weights)
    for i, (w, b, act) in enumerate(zip(weights, biases, actv_names)):
        h = jnp.dot(h, w.astype(jnp.bfloat16),
                    preferred_element_type=jnp.float32)
        h = h + b.astype(jnp.float32)
        h = _apply_activation(h, act)
        if i + 1 < n:
            h = h.astype(jnp.bfloat16)
    if decoder and use_softmax:
        h = jax.nn.sigmoid(h)
    return h


def _init_params(key, in_features, layers, decoder=False, image_size=None):
    """Deterministic init mimicking nn.Linear's default (uniform +-1/sqrt(fan_in))."""
    dim = in_features ** 2 if not decoder else in_features
    weights, biases = [], []
    dims = []
    for out_dim in layers:
        dims.append((dim, out_dim))
        dim = out_dim
    if decoder and image_size is not None and dim != image_size:
        dims.append((dim, image_size ** 2))
    for (d_in, d_out) in dims:
        key, kw, kb = jax.random.split(key, 3)
        bound = 1.0 / math.sqrt(d_in)
        # stored as (in, out): transpose of PyTorch's (out, in)
        w = jax.random.uniform(kw, (d_in, d_out), jnp.float32, -bound, bound)
        b = jax.random.uniform(kb, (d_out,), jnp.float32, -bound, bound)
        weights.append(w)
        biases.append(b)
    return weights, biases


if __name__ == "__main__":
    # Module config (encoder): use_dropout=False, use_batch_norm=False,
    # use_softmax=False, decoder=False.
    # TODO(synk): nn.Dropout / nn.BatchNorm1d paths are not exercised
    # (use_dropout=False, use_batch_norm=False in this configuration).
    in_features = 28
    layers = [128, 64, 32]
    actv_func = ["ReLU", "ReLU", "Sigmoid"]

    key = jax.random.PRNGKey(0)
    key, kx = jax.random.split(key)
    x = jax.random.normal(kx, (8, 1, 28, 28), jnp.float32)  # NCHW-style input

    weights, biases = _init_params(key, in_features, layers, decoder=False)

    forward = build_modulelist_forward(weights, biases, actv_func,
                                       decoder=False, use_softmax=False)
    out = jax.block_until_ready(forward(x))

    ref_bf16 = _reference_forward_bf16(x, weights, biases, actv_func,
                                       decoder=False, use_softmax=False)
    ref_f32 = _reference_forward_f32(x, weights, biases, actv_func,
                                     decoder=False, use_softmax=False)

    assert out.shape == (8, layers[-1]), out.shape
    assert jnp.allclose(out, ref_bf16, atol=2e-3, rtol=2e-3), \
        "mismatch vs bf16 reference"
    assert jnp.allclose(out, ref_f32, atol=5e-2, rtol=5e-2), \
        "mismatch vs f32 reference"

    print("KERNEL_OK")
</pallas_src>

<mosaic_0001>
module attributes {stable_mosaic.version = 11 : i64} {
  func.func @kernel(%arg0: i32, %arg1: memref<16x784xf32, #tpu.memory_space<vmem>>, %arg2: memref<784x128xbf16, #tpu.memory_space<vmem>>, %arg3: memref<1x128xf32, #tpu.memory_space<vmem>>, %arg4: memref<128x64xbf16, #tpu.memory_space<vmem>>, %arg5: memref<1x64xf32, #tpu.memory_space<vmem>>, %arg6: memref<64x32xbf16, #tpu.memory_space<vmem>>, %arg7: memref<1x32xf32, #tpu.memory_space<vmem>>, %arg8: memref<16x32xf32, #tpu.memory_space<vmem>>) attributes {dimension_semantics = [#tpu.dimension_semantics<parallel>], iteration_bounds = array<i64: 1>, scalar_prefetch = 0 : i64, scratch_operands = 0 : i64, tpu.core_type = #tpu.core_type<tc>, window_params = [{transform_indices = @transform_0, window_bounds = array<i64: 16, 784>}, {pipeline_mode = #tpu.pipeline_mode<synchronous>, transform_indices = @transform_1, window_bounds = array<i64: 784, 128>}, {pipeline_mode = #tpu.pipeline_mode<synchronous>, transform_indices = @transform_2, window_bounds = array<i64: 1, 128>}, {pipeline_mode = #tpu.pipeline_mode<synchronous>, transform_indices = @transform_3, window_bounds = array<i64: 128, 64>}, {pipeline_mode = #tpu.pipeline_mode<synchronous>, transform_indices = @transform_4, window_bounds = array<i64: 1, 64>}, {pipeline_mode = #tpu.pipeline_mode<synchronous>, transform_indices = @transform_5, window_bounds = array<i64: 64, 32>}, {pipeline_mode = #tpu.pipeline_mode<synchronous>, transform_indices = @transform_6, window_bounds = array<i64: 1, 32>}, {transform_indices = @transform_7, window_bounds = array<i64: 16, 32>}]} {
    %c0 = arith.constant 0 : index
    %c0_0 = arith.constant 0 : index
    %0 = vector.load %arg1[%c0, %c0_0] : memref<16x784xf32, #tpu.memory_space<vmem>>, vector<16x784xf32>
    %1 = arith.truncf %0 : vector<16x784xf32> to vector<16x784xbf16>
    %c0_1 = arith.constant 0 : index
    %c0_2 = arith.constant 0 : index
    %2 = vector.load %arg2[%c0_1, %c0_2] : memref<784x128xbf16, #tpu.memory_space<vmem>>, vector<784x128xbf16>
    %c0_3 = arith.constant 0 : index
    %c0_4 = arith.constant 0 : index
    %3 = vector.load %arg3[%c0_3, %c0_4] : memref<1x128xf32, #tpu.memory_space<vmem>>, vector<1x128xf32>
    %cst = arith.constant dense<0.000000e+00> : vector<16x128xf32>
    %4 = tpu.matmul %1, %2, %cst {dimension_numbers = #tpu.dot_dimension_numbers<[1], [0], [0], [1], [0, 0, 1, 1], [], []>} : vector<16x784xbf16>, vector<784x128xbf16>, vector<16x128xf32> -> vector<16x128xf32>
    %5 = vector.broadcast %3 : vector<1x128xf32> to vector<16x128xf32>
    %6 = arith.addf %4, %5 : vector<16x128xf32>
    %cst_5 = arith.constant 0.000000e+00 : f32
    %7 = vector.broadcast %cst_5 : f32 to vector<16x128xf32>
    %8 = arith.maximumf %6, %7 : vector<16x128xf32>
    %9 = arith.truncf %8 : vector<16x128xf32> to vector<16x128xbf16>
    %c0_6 = arith.constant 0 : index
    %c0_7 = arith.constant 0 : index
    %10 = vector.load %arg4[%c0_6, %c0_7] : memref<128x64xbf16, #tpu.memory_space<vmem>>, vector<128x64xbf16>
    %c0_8 = arith.constant 0 : index
    %c0_9 = arith.constant 0 : index
    %11 = vector.load %arg5[%c0_8, %c0_9] : memref<1x64xf32, #tpu.memory_space<vmem>>, vector<1x64xf32>
    %cst_10 = arith.constant dense<0.000000e+00> : vector<16x64xf32>
    %12 = tpu.matmul %9, %10, %cst_10 {dimension_numbers = #tpu.dot_dimension_numbers<[1], [0], [0], [1], [0, 0, 1, 1], [], []>} : vector<16x128xbf16>, vector<128x64xbf16>, vector<16x64xf32> -> vector<16x64xf32>
    %13 = vector.broadcast %11 : vector<1x64xf32> to vector<16x64xf32>
    %14 = arith.addf %12, %13 : vector<16x64xf32>
    %cst_11 = arith.constant 0.000000e+00 : f32
    %15 = vector.broadcast %cst_11 : f32 to vector<16x64xf32>
    %16 = arith.maximumf %14, %15 : vector<16x64xf32>
    %17 = arith.truncf %16 : vector<16x64xf32> to vector<16x64xbf16>
    %c0_12 = arith.constant 0 : index
    %c0_13 = arith.constant 0 : index
    %18 = vector.load %arg6[%c0_12, %c0_13] : memref<64x32xbf16, #tpu.memory_space<vmem>>, vector<64x32xbf16>
    %c0_14 = arith.constant 0 : index
    %c0_15 = arith.constant 0 : index
    %19 = vector.load %arg7[%c0_14, %c0_15] : memref<1x32xf32, #tpu.memory_space<vmem>>, vector<1x32xf32>
    %cst_16 = arith.constant dense<0.000000e+00> : vector<16x32xf32>
    %20 = tpu.matmul %17, %18, %cst_16 {dimension_numbers = #tpu.dot_dimension_numbers<[1], [0], [0], [1], [0, 0, 1, 1], [], []>} : vector<16x64xbf16>, vector<64x32xbf16>, vector<16x32xf32> -> vector<16x32xf32>
    %21 = vector.broadcast %19 : vector<1x32xf32> to vector<16x32xf32>
    %22 = arith.addf %20, %21 : vector<16x32xf32>
    %23 = arith.negf %22 : vector<16x32xf32>
    %24 = math.exp %23 : vector<16x32xf32>
    %cst_17 = arith.constant 1.000000e+00 : f32
    %25 = vector.broadcast %cst_17 : f32 to vector<16x32xf32>
    %26 = arith.addf %25, %24 : vector<16x32xf32>
    %27 = arith.divf %25, %26 : vector<16x32xf32>
    %c0_18 = arith.constant 0 : index
    %c0_19 = arith.constant 0 : index
    %28 = vector.load %arg8[%c0_18, %c0_19] : memref<16x32xf32, #tpu.memory_space<vmem>>, vector<16x32xf32>
    tpu.vector_store %arg8[%c0_18, %c0_19], %27 {strides = array<i32>} : memref<16x32xf32, #tpu.memory_space<vmem>>, vector<16x32xf32>,
    return
  }
  func.func @transform_0(%arg0: i32) -> (i32, i32) {
    %c0_i32 = arith.constant 0 : i32
    %c0_i32_0 = arith.constant 0 : i32
    return %arg0, %c0_i32 : i32, i32
  }
  func.func @transform_1(%arg0: i32) -> (i32, i32) {
    %c0_i32 = arith.constant 0 : i32
    %c0_i32_0 = arith.constant 0 : i32
    %c0_i32_1 = arith.constant 0 : i32
    return %c0_i32, %c0_i32_0 : i32, i32
  }
  func.func @transform_2(%arg0: i32) -> (i32, i32) {
    %c0_i32 = arith.constant 0 : i32
    %c0_i32_0 = arith.constant 0 : i32
    %c0_i32_1 = arith.constant 0 : i32
    return %c0_i32, %c0_i32_0 : i32, i32
  }
  func.func @transform_3(%arg0: i32) -> (i32, i32) {
    %c0_i32 = arith.constant 0 : i32
    %c0_i32_0 = arith.constant 0 : i32
    %c0_i32_1 = arith.constant 0 : i32
    return %c0_i32, %c0_i32_0 : i32, i32
  }
  func.func @transform_4(%arg0: i32) -> (i32, i32) {
    %c0_i32 = arith.constant 0 : i32
    %c0_i32_0 = arith.constant 0 : i32
    %c0_i32_1 = arith.constant 0 : i32
    return %c0_i32, %c0_i32_0 : i32, i32
  }
  func.func @transform_5(%arg0: i32) -> (i32, i32) {
    %c0_i32 = arith.constant 0 : i32
    %c0_i32_0 = arith.constant 0 : i32
    %c0_i32_1 = arith.constant 0 : i32
    return %c0_i32, %c0_i32_0 : i32, i32
  }
  func.func @transform_6(%arg0: i32) -> (i32, i32) {
    %c0_i32 = arith.constant 0 : i32
    %c0_i32_0 = arith.constant 0 : i32
    %c0_i32_1 = arith.constant 0 : i32
    return %c0_i32, %c0_i32_0 : i32, i32
  }
  func.func @transform_7(%arg0: i32) -> (i32, i32) {
    %c0_i32 = arith.constant 0 : i32
    %c0_i32_0 = arith.constant 0 : i32
    return %arg0, %c0_i32 : i32, i32
  }
}

</mosaic_0001>

<bundles_post_ra>
// kernel: forward.1
= control target key start
LH: loop header
LB: loop body
LE: loop exit
PB: predicated region body
PF: predicated region fallthrough
CT: control target
= control target key end

     0   :  { %v1095_v43 = vmov 0.0   ;;  %vm1096_vm0 = vmmov 0   ;;  %vm447_vm1 = vcmask 130048   ;;  %vm772_vm2 = vcmask 523264   ;;  %s1396_s1 = inlined_call_operand.vmem [shape: bf16[784,128], index: 1, kind: input, shape index: {}]   ;;  %s1397_s0 = inlined_call_operand.vmem [shape: f32[16,784], index: 0, kind: input, shape index: {}]   ;;  %s1398_s3 = inlined_call_operand.vmem [shape: bf16[128,64], index: 3, kind: input, shape index: {}]   ;;  %s1399_s5 = inlined_call_operand.vmem [shape: bf16[64,32], index: 5, kind: input, shape index: {}]   ;;  %s1400_s2 = inlined_call_operand.vmem [shape: f32[1,128], index: 2, kind: input, shape index: {}]   ;;  %s1401_s4 = inlined_call_operand.vmem [shape: f32[1,64], index: 4, kind: input, shape index: {}]   ;;  %s1402_s6 = inlined_call_operand.vmem [shape: f32[1,32], index: 6, kind: input, shape index: {}]   ;;  %s1403_s7 = inlined_call_operand.vmem [shape: f32[16,32], index: 7, kind: output, shape index: {}]  }
   0x1   :  { %v1026_v0 = vld [vmem:[%s1396_s1 + $0x40] sm:$0xff]   ;;  %v1030_v4 = vld [vmem:[%s1396_s1 + $0x48] sm:$0xff]   ;;  %v1034_v8 = vld [vmem:[%s1396_s1 + $0x50] sm:$0xff]   ;;  %vm829_vm3 = vcmask 261120  }
   0x2   :  { %v1027_v1 = vld [vmem:[%s1396_s1] sm:$0xff]   ;;  %904 = vmatprep.subr.bf16.mxu0 %v1026_v0  ;;  %v1031_v5 = vld [vmem:[%s1396_s1 + $0x8] sm:$0xff]   ;;  %v1035_v9 = vld [vmem:[%s1396_s1 + $0x10] sm:$0xff]  }
   0x3   :  { %v1028_v2 = vld [vmem:[%s1396_s1 + $0xc0] sm:$0xff]   ;;  %905 = vmatpush3.bf16.msra.mxu0 %v1027_v1  ;;  %v1032_v6 = vld [vmem:[%s1396_s1 + $0xc8] sm:$0xff]   ;;  %v1036_v10 = vld [vmem:[%s1396_s1 + $0xd0] sm:$0xff]  }
   0x4   :  { %v1029_v3 = vld [vmem:[%s1396_s1 + $0x80] sm:$0xff]   ;;  %926 = vmatprep.subr.bf16.mxu1 %v1028_v2  ;;  %906 = vmatprep.subr.bf16.mxu0 %v1030_v4  ;;  %v1033_v7 = vld [vmem:[%s1396_s1 + $0x88] sm:$0xff]   ;;  %v1037_v11 = vld [vmem:[%s1396_s1 + $0x90] sm:$0xff]  }
   0x5   :  { %927 = vmatpush3.bf16.msra.mxu1 %v1029_v3  ;;  %v1038_v12 = vld [vmem:[%s1396_s1 + $0x58] sm:$0xff]   ;;  %v1042_v16 = vld [vmem:[%s1396_s1 + $0x60] sm:$0xff]   ;;  %v1046_v20 = vld [vmem:[%s1396_s1 + $0x68] sm:$0xff]  }
   0x6   :  { %928 = vmatprep.subr.bf16.mxu1 %v1032_v6  ;;  %v1039_v13 = vld [vmem:[%s1396_s1 + $0x18] sm:$0xff]   ;;  %v1043_v17 = vld [vmem:[%s1396_s1 + $0x20] sm:$0xff]   ;;  %v1047_v21 = vld [vmem:[%s1396_s1 + $0x28] sm:$0xff]  }
   0x7   :  { %907 = vmatpush3.bf16.msra.mxu0 %v1031_v5  ;;  %v1040_v14 = vld [vmem:[%s1396_s1 + $0xd8] sm:$0xff]   ;;  %v1044_v18 = vld [vmem:[%s1396_s1 + $0xe0] sm:$0xff]   ;;  %v1048_v22 = vld [vmem:[%s1396_s1 + $0xe8] sm:$0xff]  }
   0x8   :  { %908 = vmatprep.subr.bf16.mxu0 %v1034_v8  ;;  %v1041_v15 = vld [vmem:[%s1396_s1 + $0x98] sm:$0xff]   ;;  %v1045_v19 = vld [vmem:[%s1396_s1 + $0xa0] sm:$0xff]   ;;  %v1049_v23 = vld [vmem:[%s1396_s1 + $0xa8] sm:$0xff]  }
   0x9   :  { %929 = vmatpush3.bf16.msra.mxu1 %v1033_v7  ;;  %v1050_v24 = vld [vmem:[%s1396_s1 + $0x70] sm:$0xff]   ;;  %v1054_v28 = vld [vmem:[%s1396_s1 + $0x78] sm:$0xff]   ;;  %v28_v31 = vld [vmem:[%s1397_s0 + $0x8] sm:$0xff] }
   0xa   :  { %930 = vmatprep.subr.bf16.mxu1 %v1036_v10  ;;  %v1051_v25 = vld [vmem:[%s1396_s1 + $0x30] sm:$0xff]   ;;  %v1055_v29 = vld [vmem:[%s1396_s1 + $0x38] sm:$0xff]   ;;  %v35_v32 = vld [vmem:[%s1397_s0 + $0x40] sm:$0xff] }
   0xb   :  { %909 = vmatpush3.bf16.msra.mxu0 %v1035_v9  ;;  %v1052_v26 = vld [vmem:[%s1396_s1 + $0xf0] sm:$0xff]   ;;  %v1056_v30 = vld [vmem:[%s1396_s1 + $0xf8] sm:$0xff]   ;;  %v42_v33 = vpack.c.bf16 %v35_v32, %v28_v31  ;;  %v27_v35 = vld [vmem:[%s1397_s0] sm:$0xff] }
   0xc   :  { %910 = vmatprep.subr.bf16.mxu0 %v1038_v12  ;;  %v1053_v27 = vld [vmem:[%s1396_s1 + $0xb0] sm:$0xff]   ;;  %v1057_v34 = vld [vmem:[%s1396_s1 + $0xb8] sm:$0xff]   ;;  %v1058_v38 = vld [vmem:[%s1396_s1 + $0x140] sm:$0xff]  }
   0xd   :  { %931 = vmatpush3.bf16.msra.mxu1 %v1037_v11  ;;  %v34_v36 = vld [vmem:[%s1397_s0 + $0x38] sm:$0xff]  ;;  %483 = vmatprep.mubr.bf16.mxu0 %v42_v33  ;;  %v37_v40 = vld [vmem:[%s1397_s0 + $0x50] sm:$0xff]  ;;  %v1059_v42 = vld [vmem:[%s1396_s1 + $0x100] sm:$0xff]  }
   0xe   :  { %932 = vmatprep.subr.bf16.mxu1 %v1040_v14  ;;  %v41_v37 = vpack.c.bf16 %v34_v36, %v27_v35  ;;  %v30_v39 = vld [vmem:[%s1397_s0 + $0x18] sm:$0xff]  ;;  %v29_v44 = vld [vmem:[%s1397_s0 + $0x10] sm:$0xff]  ;;  %v36_v45 = vld [vmem:[%s1397_s0 + $0x48] sm:$0xff] }
   0xf   :  { %911 = vmatpush3.bf16.msra.mxu0 %v1039_v13  ;;  %v44_v41 = vpack.c.bf16 %v37_v40, %v30_v39  ;;  %v43_v46 = vpack.c.bf16 %v36_v45, %v29_v44  ;;  %v1060_v47 = vld [vmem:[%s1396_s1 + $0x148] sm:$0xff]   ;;  %v1062_v49 = vld [vmem:[%s1396_s1 + $0x150] sm:$0xff]   ;;  %v1064_v51 = vld [vmem:[%s1396_s1 + $0x158] sm:$0xff]  }
  0x10   :  { %912 = vmatprep.subr.bf16.mxu0 %v1042_v16  ;;  %v1061_v48 = vld [vmem:[%s1396_s1 + $0x108] sm:$0xff]   ;;  %v1063_v50 = vld [vmem:[%s1396_s1 + $0x110] sm:$0xff]   ;;  %v1065_v52 = vld [vmem:[%s1396_s1 + $0x118] sm:$0xff]  }
  0x11   :  { %933 = vmatpush3.bf16.msra.mxu1 %v1041_v15  ;;  %524 = vmatprep.mubr.bf16.mxu1 %v44_v41  ;;  %v1066_v53 = vld [vmem:[%s1396_s1 + $0x160] sm:$0xff]   ;;  %v1068_v55 = vld [vmem:[%s1396_s1 + $0x168] sm:$0xff]   ;;  %v33_v61 = vld [vmem:[%s1397_s0 + $0x30] sm:$0xff] }
  0x12   :  { %934 = vmatprep.subr.bf16.mxu1 %v1044_v18  ;;  %v1067_v54 = vld [vmem:[%s1396_s1 + $0x120] sm:$0xff]   ;;  %v32_v57 = vld [vmem:[%s1397_s0 + $0x28] sm:$0xff]  ;;  %v1070_v63 = vld [vmem:[%s1396_s1 + $0x170] sm:$0xff]  }
  0x13   :  { %913 = vmatpush3.bf16.msra.mxu0 %v1043_v17  ;;  %v1074_v56 = vld [vmem:[%s1396_s1 + $0x180] sm:$0xff]   ;;  %v1069_v59 = vld [vmem:[%s1396_s1 + $0x128] sm:$0xff]   ;;  %v1071_v1 = vld [vmem:[%s1396_s1 + $0x130] sm:$0xff]  }
  0x14   :  { %914 = vmatprep.subr.bf16.mxu0 %v1046_v20  ;;  %v39_v58 = vld [vmem:[%s1397_s0 + $0x60] sm:$0xff]  ;;  %v40_v62 = vld [vmem:[%s1397_s0 + $0x68] sm:$0xff]  ;;  %v1072_v2 = vld [vmem:[%s1396_s1 + $0x178] sm:$0xff]  }
  0x15   :  { %935 = vmatpush3.bf16.msra.mxu1 %v1045_v19  ;;  %v46_v60 = vpack.c.bf16 %v39_v58, %v32_v57  ;;  %v47_v0 = vpack.c.bf16 %v40_v62, %v33_v61  ;;  %v1073_v3 = vld [vmem:[%s1396_s1 + $0x138] sm:$0xff]   ;;  %v31_v4 = vld [vmem:[%s1397_s0 + $0x20] sm:$0xff]  ;;  %v1076_v8 = vld [vmem:[%s1398_s3 + $0x8] sm:$0xff]  }
  0x16   :  { %936 = vmatprep.subr.bf16.mxu1 %v1048_v22  ;;  %v38_v5 = vld [vmem:[%s1397_s0 + $0x58] sm:$0xff]  ;;  %v1075_v7 = vld [vmem:[%s1398_s3] sm:$0xff]   ;;  %v1077_v9 = vld [vmem:[%s1398_s3 + $0x10] sm:$0xff]  }
  0x17   :  { %915 = vmatpush3.bf16.msra.mxu0 %v1047_v21  ;;  %v45_v6 = vpack.c.bf16 %v38_v5, %v31_v4  ;;  %v1078_v10 = vld [vmem:[%s1398_s3 + $0x18] sm:$0xff]   ;;  %v1079_v11 = vld [vmem:[%s1398_s3 + $0x20] sm:$0xff]   ;;  %v1080_v12 = vld [vmem:[%s1398_s3 + $0x28] sm:$0xff]  }
  0x18   :  { %916 = vmatprep.subr.bf16.mxu0 %v1050_v24  ;;  %v1081_v13 = vld [vmem:[%s1398_s3 + $0x30] sm:$0xff]   ;;  %v1082_v14 = vld [vmem:[%s1398_s3 + $0x38] sm:$0xff]   ;;  %v1083_v15 = vld [vmem:[%s1399_s5] sm:$0xff]  }
  0x19   :  { %937 = vmatpush3.bf16.msra.mxu1 %v1049_v23  ;;  %v1084_v16 = vld [vmem:[%s1399_s5 + $0x8] sm:$0xff]   ;;  %v836_v18 = vld [vmem:[%s1400_s2] ss:$0 sm:$0xff] }
  0x1a   :  { %938 = vmatprep.subr.bf16.mxu1 %v1052_v26 }
  0x1b   :  { %917 = vmatpush3.bf16.msra.mxu0 %v1051_v25 }
  0x1c   :  { %918 = vmatprep.subr.bf16.mxu0 %v1054_v28 }
  0x1d   :  { %939 = vmatpush3.bf16.msra.mxu1 %v1053_v27 }
  0x1e   :  { %940 = vmatprep.subr.bf16.mxu1 %v1056_v30 }
  0x1f   :  { %919 = vmatpush3.bf16.msra.mxu0 %v1055_v29 }
  0x20   :  { %948 = vmatprep.subr.bf16.mxu0 %v1058_v38 }
  0x21   :  { %941 = vmatpush3.bf16.msra.mxu1 %v1057_v34 }
  0x22   :  { %986 = vmatprep.subr.bf16.mxu1 %v1095_v43  ;;  %484 = vmatmul.mubr.bf16.vlgmr.msra.gmra.mrb[0].mxu0 %v41_v37 }
  0x23   :  { %949 = vmatpush3.bf16.msra.mxu0 %v1059_v42  ;;  %565 = vmatprep.mubr.bf16.mxu0 %v46_v60 }
  0x24   :  { %525 = vmatmul.mubr.bf16.vlgmr.msra.gmra.mrb[0].mxu1 %v43_v46  ;;  %950 = vmatprep.subr.bf16.mxu0 %v1060_v47 }
  0x25   :  { %988 = vmatprep.mubr.msk.bf16.mxu1 %vm1096_vm0, %v1095_v43  ;;  %987 = vmatpush3.bf16.msra.mxu1 %v1074_v56 }
  0x26   :  { %992 = vmatprep.subr.bf16.mxu1 %v1095_v43 }
  0x27   :  { %951 = vmatpush3.bf16.msra.mxu0 %v1061_v48 }
  0x28   :  { %952 = vmatprep.subr.bf16.mxu0 %v1062_v49 }
  0x2b   :  { %953 = vmatpush3.bf16.msra.mxu0 %v1063_v50 }
  0x2c   :  { %954 = vmatprep.subr.bf16.mxu0 %v1064_v51  ;;  %989 = vmatmul.mubr.msk.bf16.vlgmr.msra.gmra.mrb[4].mxu1 %vm447_vm1, %v47_v0 }
  0x2d   :  { %1008 = vmatprep.mubr.msk.bf16.mxu1 %vm1096_vm0, %v1095_v43  ;;  %993 = vmatpush3.bf16.msra.mxu1 %v1075_v7 }
  0x2e   :  { %994 = vmatprep.subr.bf16.mxu1 %v1095_v43 }
  0x2f   :  { %955 = vmatpush3.bf16.msra.mxu0 %v1065_v52  ;;  %v1085_v52 = vld [vmem:[%s1399_s5 + $0x10] sm:$0xff]  }
  0x30   :  { %956 = vmatprep.subr.bf16.mxu0 %v1066_v53  ;;  %v1086_v53 = vld [vmem:[%s1399_s5 + $0x18] sm:$0xff]  }
  0x31   :  { %995 = vmatpush3.bf16.msra.mxu1 %v1076_v8 }
  0x32   :  { %996 = vmatprep.subr.bf16.mxu1 %v1095_v43 }
  0x33   :  { %957 = vmatpush3.bf16.msra.mxu0 %v1067_v54  ;;  %v887_v54 = vld [vmem:[%s1401_s4] ss:$0 sm:$0xff] }
  0x34   :  { %958 = vmatprep.subr.bf16.mxu0 %v1068_v55 }
  0x35   :  { %997 = vmatpush3.bf16.msra.mxu1 %v1077_v9 }
  0x36   :  { %998 = vmatprep.subr.bf16.mxu1 %v1095_v43 }
  0x37   :  { %959 = vmatpush3.bf16.msra.mxu0 %v1069_v59 }
  0x38   :  { %960 = vmatprep.subr.bf16.mxu0 %v1070_v63 }
  0x39   :  { %999 = vmatpush3.bf16.msra.mxu1 %v1078_v10 }
  0x3a   :  { %1000 = vmatprep.subr.bf16.mxu1 %v1095_v43 }
  0x3b   :  { %961 = vmatpush3.bf16.msra.mxu0 %v1071_v1 }
  0x3c   :  { %962 = vmatprep.subr.bf16.mxu0 %v1072_v2 }
  0x3d   :  { %1001 = vmatpush3.bf16.msra.mxu1 %v1079_v11 }
  0x3e   :  { %1002 = vmatprep.subr.bf16.mxu1 %v1095_v43 }
  0x3f   :  { %963 = vmatpush3.bf16.msra.mxu0 %v1073_v3 }
  0x40   :  { %1012 = vmatprep.subr.bf16.mxu0 %v1095_v43 }
  0x41   :  { %1003 = vmatpush3.bf16.msra.mxu1 %v1080_v12 }
  0x42   :  { %566 = vmatmul.mubr.bf16.vlgmr.msra.gmra.mrb[4].mxu0 %v45_v6  ;;  %1004 = vmatprep.subr.bf16.mxu1 %v1095_v43 }
  0x43   :  { %1020 = vmatprep.mubr.msk.bf16.mxu0 %vm1096_vm0, %v1095_v43  ;;  %1013 = vmatpush3.bf16.msra.mxu0 %v1083_v15 }
  0x44   :  { %1014 = vmatprep.subr.bf16.mxu0 %v1095_v43 }
  0x45   :  { %1005 = vmatpush3.bf16.msra.mxu1 %v1081_v13 }
  0x46   :  { %1006 = vmatprep.subr.bf16.mxu1 %v1095_v43 }
  0x47   :  { %1015 = vmatpush3.bf16.msra.mxu0 %v1084_v16 }
  0x48   :  { %1016 = vmatprep.subr.bf16.mxu0 %v1095_v43 }
  0x49   :  { %1007 = vmatpush3.bf16.msra.mxu1 %v1082_v14 }
  0x4b   :  { %1017 = vmatpush3.bf16.msra.mxu0 %v1085_v52 }
  0x4c   :  { %1018 = vmatprep.subr.bf16.mxu0 %v1095_v43  ;;  %v896_v43 = vld [vmem:[%s1402_s6] ss:$0 sm:$0xff] }
  0x4f   :  { %1019 = vmatpush3.bf16.msra.mxu0 %v1086_v53 }
  0xf5   :  { %v920_v17 = vpop.f32.mrb[0].mxu0 }
  0xf6   :  { %v921_v19 = vpop.f32.mrb[1].mxu0 }
  0xf7   :  { %v922_v20 = vadd.f32 %v921_v19, %v920_v17  ;;  %v923_v21 = vpop.f32.mrb[2].mxu0  ;;  %v942_v22 = vpop.f32.mrb[0].mxu1 }
  0xf8   :  { %v924_v23 = vpop.f32.mrb[3].mxu0  ;;  %v943_v26 = vpop.f32.mrb[1].mxu1 }
  0xf9   :  { %v486_v24 = vadd.f32 %v922_v20, %v836_v18  ;;  %v925_v25 = vadd.f32 %v924_v23, %v923_v21  ;;  %v944_v27 = vadd.f32 %v943_v26, %v942_v22  ;;  %v945_v28 = vpop.f32.mrb[2].mxu1 }
  0xfa   :  { %v946_v30 = vpop.f32.mrb[3].mxu1 }
  0xfb   :  { %v489_v29 = vadd.f32 %v925_v25, %v836_v18  ;;  %v527_v31 = vadd.f32 %v944_v27, %v486_v24  ;;  %v947_v32 = vadd.f32 %v946_v30, %v945_v28 }
  0xfd   :  { %v530_v33 = vadd.f32 %v947_v32, %v489_v29 }
  0xff   :  { %v608_v34 = vpop.f32.mrb[4].mxu1 }
 0x100   :  { %v990_v35 = vpop.f32.mrb[5].mxu1 }
 0x101   :  { %v611_v36 = vpop.f32.mrb[6].mxu1 }
 0x102   :  { %v991_v37 = vpop.f32.mrb[7].mxu1 }
 0x115   :  { %v964_v38 = vpop.f32.mrb[4].mxu0 }
 0x116   :  { %v965_v39 = vpop.f32.mrb[5].mxu0 }
 0x117   :  { %v966_v40 = vadd.f32 %v965_v39, %v964_v38  ;;  %v967_v41 = vpop.f32.mrb[6].mxu0 }
 0x118   :  { %v968_v42 = vpop.f32.mrb[7].mxu0 }
 0x119   :  { %v568_v44 = vadd.f32 %v966_v40, %v527_v31  ;;  %v969_v45 = vadd.f32 %v968_v42, %v967_v41 }
 0x11b   :  { %v609_v46 = vadd.f32 %v608_v34, %v568_v44  ;;  %v571_v47 = vadd.f32 %v969_v45, %v530_v33 }
 0x11d   :  { %v612_v48 = vadd.f32 %v611_v36, %v571_v47  ;;  %v615_v49 = vmax.f32 %v609_v46, 0.0 }
 0x11f   :  { %v616_v50 = vmax.f32 %v612_v48, 0.0 }
 0x121   :  { %v617_v51 = vpack.c.bf16 %v616_v50, %v615_v49 }
 0x123   :  { %1009 = vmatmul.mubr.bf16.vlgmr.msra.gmra.mrb[8].mxu1 %v617_v51 }
 0x1f6   :  { %v723_v55 = vpop.f32.mrb[8].mxu1 }
 0x1f7   :  { %v724_v56 = vadd.f32 %v887_v54, %v723_v55  ;;  %v1010_v57 = vpop.f32.mrb[9].mxu1 }
 0x1f8   :  { %v726_v58 = vpop.f32.mrb[10].mxu1 }
 0x1f9   :  { %v727_v59 = vadd.f32 %v887_v54, %v726_v58  ;;  %v1011_v60 = vpop.f32.mrb[11].mxu1  ;;  %v730_v61 = vmax.f32 %v724_v56, 0.0 }
 0x1fb   :  { %v731_v62 = vmax.f32 %v727_v59, 0.0 }
 0x1fd   :  { %v732_v63 = vpack.c.bf16 %v731_v62, %v730_v61 }
 0x1ff   :  { %1021 = vmatmul.mubr.msk.bf16.vlgmr.msra.gmra.mrb[8].mxu0 %vm772_vm2, %v732_v63 }
 0x2d2   :  { %v810_v0 = vpop.f32.mrb[8].mxu0 }
 0x2d3   :  { %v811_v1 = vadd.f32 %v896_v43, %v810_v0  ;;  %v1022_v2 = vpop.f32.mrb[9].mxu0 }
 0x2d4   :  { %v813_v3 = vpop.f32.mrb[10].mxu0 }
 0x2d5   :  { %v902_v4 = vmul.f32 -1.442695, %v811_v1  ;;  %v814_v5 = vadd.f32 %v896_v43, %v813_v3  ;;  %v1023_v6 = vpop.f32.mrb[11].mxu0 }
 0x2d7   :  { %1087 = vpow2.f32 %v902_v4  ;;  %v903_v7 = vmul.f32 -1.442695, %v814_v5 }
 0x2d9   :  { %1089 = vpow2.f32 %v903_v7 }
 0x2e1   :  { %v1088_v8 = vpop.eup %1087 }
 0x2e2   :  { %v823_v9 = vadd.f32 1.0, %v1088_v8 }
 0x2e3   :  { %v1090_v10 = vpop.eup %1089 }
 0x2e4   :  { %1091 = vrcp.f32 %v823_v9  ;;  %v824_v11 = vadd.f32 1.0, %v1090_v10 }
 0x2e6   :  { %1093 = vrcp.f32 %v824_v11 }
 0x2ee   :  { %v1092_v12 = vpop.eup %1091 }
 0x2ef   :  { %830 = vst.msk [vmem:[%s1403_s7] sm:$0xff] %vm829_vm3, %v1092_v12 }
 0x2f0   :  { %v1094_v13 = vpop.eup %1093 }
 0x2f1   :  { %831 = vst.msk [vmem:[%s1403_s7 + $0x8] sm:$0xff] %vm829_vm3, %v1094_v13 }

</bundles_post_ra>
